<compile_context>
chip_gen: v6e
topology: v6e:2x2x1
jax: 0.10.0
libtpu: 0.0.40
codegen_flags: <defaults>
</compile_context>

<pallas_src>
import functools

import jax
import jax.numpy as jnp
from jax.experimental import pallas as pl
from jax.experimental.pallas import tpu as pltpu


def _bert_output_kernel(h_ref, w_ref, b_ref, res_ref, gamma_ref, beta_ref,
                        o_ref, *, eps):
    # Dense: activation tile cast to bf16 (streamed, each tile seen once), weight is
    # already bf16 (pre-cast once in the wrapper). f32 accumulation on the MXU.
    a = h_ref[...].astype(jnp.bfloat16)
    x = jnp.dot(a, w_ref[...], preferred_element_type=jnp.float32)

    # Bias + residual add in f32.  Dropout is identity in eval / inference mode.
    # TODO(synk): training-mode dropout (stochastic masking via pltpu.prng_*) not implemented.
    x = x + b_ref[...] + res_ref[...].astype(jnp.float32)

    # BertLayerNorm (TF style: eps inside the sqrt).  Two-pass statistics over the
    # last (lane) axis (mean, then mean of centered squares) — avoids the
    # E[x^2]-mean^2 cancellation issue; the extra VALU pass is free on this
    # memory-bound kernel.
    inv_h = jnp.float32(1.0 / x.shape[-1])
    mean = jnp.sum(x, axis=-1, keepdims=True) * inv_h
    xc = x - mean
    var = jnp.sum(xc * xc, axis=-1, keepdims=True) * inv_h
    inv_std = jax.lax.rsqrt(var + eps)          # EUP rsqrt, no VALU divide
    y = gamma_ref[...] * (xc * inv_std) + beta_ref[...]
    o_ref[...] = y.astype(o_ref.dtype)


def _round_up(x, m):
    return (x + m - 1) // m * m


def _vmem_capacity_bytes():
    try:
        return int(pltpu.get_tpu_info().vmem_capacity_bytes)
    except Exception:
        return 128 * 1024 * 1024  # conservative fallback (v5e / v6e size)


def bert_output(hidden_states, input_tensor, dense_w, dense_b, ln_gamma, ln_beta,
                *, eps=1e-12, tile_m=512, out_dtype=None):
    """hidden_states: (B, S, I);  input_tensor: (B, S, H) -> (B, S, H)."""
    B, S, I = hidden_states.shape
    H = input_tensor.shape[-1]
    M = B * S
    out_dtype = hidden_states.dtype if out_dtype is None else out_dtype

    # No jnp.pad: rely on Pallas's ragged final block.  Rows are independent, so
    # garbage rows read past M are harmless and their writes are masked.
    h2d = hidden_states.reshape(M, I)
    r2d = input_tensor.reshape(M, H)

    # Resident operands: weight cast to bf16 ONCE here (MXU-native), bias / gamma /
    # beta kept in f32 for the epilogue.
    w_bf16 = dense_w.astype(jnp.bfloat16)
    b2d = dense_b.reshape(1, H).astype(jnp.float32)
    g2d = ln_gamma.reshape(1, H).astype(jnp.float32)
    be2d = ln_beta.reshape(1, H).astype(jnp.float32)

    act_bytes = h2d.dtype.itemsize
    res_bytes = r2d.dtype.itemsize
    out_bytes = jnp.dtype(out_dtype).itemsize

    # ---- tile_m selection ------------------------------------------------------
    tile_m = max(8, min(tile_m, _round_up(M, 8)))
    # Keep >= 2 blocks on the parallel M axis when there is enough work, so a
    # 2-TensorCore chip (v7x) doesn't leave one core idle.
    if M >= 512 and pl.cdiv(M, tile_m) == 1:
        tile_m = _round_up(pl.cdiv(M, 2), 8)

    vmem_cap = min(int(0.8 * _vmem_capacity_bytes()), 100 * 1024 * 1024)

    def vmem_est(tm):
        return (I * H * 2                    # resident bf16 weight (single buffer)
                + 2 * tm * I * act_bytes     # streamed activation tile (double buffer)
                + tm * I * 2                 # in-kernel bf16 copy of activation tile
                + 2 * tm * H * res_bytes     # streamed residual tile (double buffer)
                + 2 * tm * H * out_bytes     # streamed output tile (double buffer)
                + 3 * H * 4                  # bias / gamma / beta (single buffer)
                + 4 * tm * H * 4)            # f32 matmul result + LN intermediates

    # Shrink the M tile until the (head-roomed) estimate fits this chip's VMEM.
    while tile_m > 64 and int(1.5 * vmem_est(tile_m)) > vmem_cap:
        tile_m = _round_up(max(tile_m // 2, 8), 8)

    grid_m = pl.cdiv(M, tile_m)

    vmem_limit = max(int(1.5 * vmem_est(tile_m)), 16 * 1024 * 1024)
    vmem_limit = min(vmem_limit, vmem_cap)

    cost = pl.CostEstimate(
        flops=2 * M * I * H,
        transcendentals=M,                   # one rsqrt per row
        bytes_accessed=(M * I * act_bytes + I * H * 2
                        + M * H * res_bytes + M * H * out_bytes + 3 * H * 4),
    )

    kernel = functools.partial(_bert_output_kernel, eps=eps)

    out2d = pl.pallas_call(
        kernel,
        out_shape=jax.ShapeDtypeStruct((M, H), out_dtype),
        grid_spec=pltpu.PrefetchScalarGridSpec(
            num_scalar_prefetch=0,
            grid=(grid_m,),
            in_specs=[
                # activation rows (streamed over the grid, default double-buffer)
                pl.BlockSpec((tile_m, I), lambda i: (i, 0)),
                # resident bf16 weight: constant index map -> single buffer
                pl.BlockSpec((I, H), lambda i: (0, 0), pipeline_mode=pl.Buffered(1)),
                pl.BlockSpec((1, H), lambda i: (0, 0), pipeline_mode=pl.Buffered(1)),
                # residual rows (streamed)
                pl.BlockSpec((tile_m, H), lambda i: (i, 0)),
                pl.BlockSpec((1, H), lambda i: (0, 0), pipeline_mode=pl.Buffered(1)),
                pl.BlockSpec((1, H), lambda i: (0, 0), pipeline_mode=pl.Buffered(1)),
            ],
            out_specs=pl.BlockSpec((tile_m, H), lambda i: (i, 0)),
        ),
        compiler_params=pltpu.CompilerParams(
            dimension_semantics=("parallel",),
            vmem_limit_bytes=vmem_limit,
        ),
        cost_estimate=cost,
    )(h2d, w_bf16, b2d, r2d, g2d, be2d)

    return out2d.reshape(B, S, H)


def reference(hidden_states, input_tensor, dense_w, dense_b, ln_gamma, ln_beta,
              eps=1e-12):
    x = jnp.einsum("bsi,ih->bsh", hidden_states, dense_w) + dense_b
    x = x + input_tensor
    u = jnp.mean(x, axis=-1, keepdims=True)
    s = jnp.mean((x - u) ** 2, axis=-1, keepdims=True)
    xn = (x - u) / jnp.sqrt(s + eps)
    return ln_gamma * xn + ln_beta


def _run_check(key, B, S, I, H, eps=1e-12, tile_m=512):
    k1, k2, k3 = jax.random.split(key, 3)
    hidden_states = jax.random.normal(k1, (B, S, I), dtype=jnp.float32)
    input_tensor = jax.random.normal(k2, (B, S, H), dtype=jnp.float32)
    dense_w = jax.random.normal(k3, (I, H), dtype=jnp.float32) * (1.0 / jnp.sqrt(I))
    dense_b = jnp.zeros((H,), dtype=jnp.float32)
    ln_gamma = jnp.ones((H,), dtype=jnp.float32)
    ln_beta = jnp.zeros((H,), dtype=jnp.float32)

    out = bert_output(hidden_states, input_tensor, dense_w, dense_b,
                      ln_gamma, ln_beta, eps=eps, tile_m=tile_m)
    out = jax.block_until_ready(out)

    ref = reference(hidden_states, input_tensor, dense_w, dense_b,
                    ln_gamma, ln_beta, eps=eps)
    assert out.shape == (B, S, H)
    # bf16 MXU operands vs f32 reference -> bf16-level tolerance.
    assert jnp.allclose(out, ref, atol=3e-2, rtol=3e-2), "mismatch vs reference"


if __name__ == "__main__":
    key = jax.random.PRNGKey(0)
    k_small, k_big = jax.random.split(key)

    # Small config: batch=2, seq=8, intermediate=64, hidden=32 (single tile).
    _run_check(k_small, B=2, S=8, I=64, H=32)

    # Larger config, single tile covering all rows exactly (M = 272, tile_m -> 272).
    _run_check(k_big, B=2, S=136, I=512, H=256)

    # Same config with tile_m=256: multi-block grid + ragged final block
    # (272 = 256 + 16) exercising the no-padding path with masked OOB writes.
    _run_check(k_big, B=2, S=136, I=512, H=256, tile_m=256)

    print("KERNEL_OK")
</pallas_src>

<mosaic_0001>
module attributes {stable_mosaic.version = 11 : i64} {
  func.func @_bert_output_kernel(%arg0: i32, %arg1: memref<16x64xf32, #tpu.memory_space<vmem>>, %arg2: memref<64x32xbf16, #tpu.memory_space<vmem>>, %arg3: memref<1x32xf32, #tpu.memory_space<vmem>>, %arg4: memref<16x32xf32, #tpu.memory_space<vmem>>, %arg5: memref<1x32xf32, #tpu.memory_space<vmem>>, %arg6: memref<1x32xf32, #tpu.memory_space<vmem>>, %arg7: memref<16x32xf32, #tpu.memory_space<vmem>>) attributes {dimension_semantics = [#tpu.dimension_semantics<parallel>], iteration_bounds = array<i64: 1>, scalar_prefetch = 0 : i64, scratch_operands = 0 : i64, tpu.core_type = #tpu.core_type<tc>, window_params = [{transform_indices = @transform_0, window_bounds = array<i64: 16, 64>}, {pipeline_mode = #tpu.pipeline_mode<synchronous>, transform_indices = @transform_1, window_bounds = array<i64: 64, 32>}, {pipeline_mode = #tpu.pipeline_mode<synchronous>, transform_indices = @transform_2, window_bounds = array<i64: 1, 32>}, {transform_indices = @transform_3, window_bounds = array<i64: 16, 32>}, {pipeline_mode = #tpu.pipeline_mode<synchronous>, transform_indices = @transform_4, window_bounds = array<i64: 1, 32>}, {pipeline_mode = #tpu.pipeline_mode<synchronous>, transform_indices = @transform_5, window_bounds = array<i64: 1, 32>}, {transform_indices = @transform_6, window_bounds = array<i64: 16, 32>}]} {
    %c0 = arith.constant 0 : index
    %c0_0 = arith.constant 0 : index
    %0 = vector.load %arg1[%c0, %c0_0] : memref<16x64xf32, #tpu.memory_space<vmem>>, vector<16x64xf32>
    %1 = arith.truncf %0 : vector<16x64xf32> to vector<16x64xbf16>
    %c0_1 = arith.constant 0 : index
    %c0_2 = arith.constant 0 : index
    %2 = vector.load %arg2[%c0_1, %c0_2] : memref<64x32xbf16, #tpu.memory_space<vmem>>, vector<64x32xbf16>
    %cst = arith.constant dense<0.000000e+00> : vector<16x32xf32>
    %3 = tpu.matmul %1, %2, %cst {dimension_numbers = #tpu.dot_dimension_numbers<[1], [0], [0], [1], [0, 0, 1, 1], [], []>} : vector<16x64xbf16>, vector<64x32xbf16>, vector<16x32xf32> -> vector<16x32xf32>
    %c0_3 = arith.constant 0 : index
    %c0_4 = arith.constant 0 : index
    %4 = vector.load %arg3[%c0_3, %c0_4] : memref<1x32xf32, #tpu.memory_space<vmem>>, vector<1x32xf32>
    %5 = vector.broadcast %4 : vector<1x32xf32> to vector<16x32xf32>
    %6 = arith.addf %3, %5 : vector<16x32xf32>
    %c0_5 = arith.constant 0 : index
    %c0_6 = arith.constant 0 : index
    %7 = vector.load %arg4[%c0_5, %c0_6] : memref<16x32xf32, #tpu.memory_space<vmem>>, vector<16x32xf32>
    %8 = arith.addf %6, %7 : vector<16x32xf32>
    %cst_7 = arith.constant dense<0.000000e+00> : vector<16xf32>
    %9 = vector.multi_reduction <add>, %8, %cst_7 [1] : vector<16x32xf32> to vector<16xf32>
    %10 = vector.shape_cast %9 : vector<16xf32> to vector<16x1xf32>
    %cst_8 = arith.constant 3.125000e-02 : f32
    %11 = vector.broadcast %cst_8 : f32 to vector<16x1xf32>
    %12 = arith.mulf %10, %11 : vector<16x1xf32>
    %13 = vector.broadcast %12 : vector<16x1xf32> to vector<16x32xf32>
    %14 = arith.subf %8, %13 : vector<16x32xf32>
    %15 = arith.mulf %14, %14 : vector<16x32xf32>
    %cst_9 = arith.constant dense<0.000000e+00> : vector<16xf32>
    %16 = vector.multi_reduction <add>, %15, %cst_9 [1] : vector<16x32xf32> to vector<16xf32>
    %17 = vector.shape_cast %16 : vector<16xf32> to vector<16x1xf32>
    %cst_10 = arith.constant 3.125000e-02 : f32
    %18 = vector.broadcast %cst_10 : f32 to vector<16x1xf32>
    %19 = arith.mulf %17, %18 : vector<16x1xf32>
    %cst_11 = arith.constant 9.99999996E-13 : f32
    %20 = vector.broadcast %cst_11 : f32 to vector<16x1xf32>
    %21 = arith.addf %19, %20 : vector<16x1xf32>
    %22 = math.rsqrt %21 : vector<16x1xf32>
    %c0_12 = arith.constant 0 : index
    %c0_13 = arith.constant 0 : index
    %23 = vector.load %arg5[%c0_12, %c0_13] : memref<1x32xf32, #tpu.memory_space<vmem>>, vector<1x32xf32>
    %24 = vector.broadcast %22 : vector<16x1xf32> to vector<16x32xf32>
    %25 = arith.mulf %14, %24 : vector<16x32xf32>
    %26 = vector.broadcast %23 : vector<1x32xf32> to vector<16x32xf32>
    %27 = arith.mulf %26, %25 : vector<16x32xf32>
    %c0_14 = arith.constant 0 : index
    %c0_15 = arith.constant 0 : index
    %28 = vector.load %arg6[%c0_14, %c0_15] : memref<1x32xf32, #tpu.memory_space<vmem>>, vector<1x32xf32>
    %29 = vector.broadcast %28 : vector<1x32xf32> to vector<16x32xf32>
    %30 = arith.addf %27, %29 : vector<16x32xf32>
    %c0_16 = arith.constant 0 : index
    %c0_17 = arith.constant 0 : index
    %31 = vector.load %arg7[%c0_16, %c0_17] : memref<16x32xf32, #tpu.memory_space<vmem>>, vector<16x32xf32>
    tpu.vector_store %arg7[%c0_16, %c0_17], %30 {strides = array<i32>} : memref<16x32xf32, #tpu.memory_space<vmem>>, vector<16x32xf32>,
    return
  }
  func.func @transform_0(%arg0: i32) -> (i32, i32) {
    %c0_i32 = arith.constant 0 : i32
    %c0_i32_0 = arith.constant 0 : i32
    return %arg0, %c0_i32 : i32, i32
  }
  func.func @transform_1(%arg0: i32) -> (i32, i32) {
    %c0_i32 = arith.constant 0 : i32
    %c0_i32_0 = arith.constant 0 : i32
    %c0_i32_1 = arith.constant 0 : i32
    return %c0_i32, %c0_i32_0 : i32, i32
  }
  func.func @transform_2(%arg0: i32) -> (i32, i32) {
    %c0_i32 = arith.constant 0 : i32
    %c0_i32_0 = arith.constant 0 : i32
    %c0_i32_1 = arith.constant 0 : i32
    return %c0_i32, %c0_i32_0 : i32, i32
  }
  func.func @transform_3(%arg0: i32) -> (i32, i32) {
    %c0_i32 = arith.constant 0 : i32
    %c0_i32_0 = arith.constant 0 : i32
    return %arg0, %c0_i32 : i32, i32
  }
  func.func @transform_4(%arg0: i32) -> (i32, i32) {
    %c0_i32 = arith.constant 0 : i32
    %c0_i32_0 = arith.constant 0 : i32
    %c0_i32_1 = arith.constant 0 : i32
    return %c0_i32, %c0_i32_0 : i32, i32
  }
  func.func @transform_5(%arg0: i32) -> (i32, i32) {
    %c0_i32 = arith.constant 0 : i32
    %c0_i32_0 = arith.constant 0 : i32
    %c0_i32_1 = arith.constant 0 : i32
    return %c0_i32, %c0_i32_0 : i32, i32
  }
  func.func @transform_6(%arg0: i32) -> (i32, i32) {
    %c0_i32 = arith.constant 0 : i32
    %c0_i32_0 = arith.constant 0 : i32
    return %arg0, %c0_i32 : i32, i32
  }
}

</mosaic_0001>

<bundles_post_ra>
// kernel: tpu_custom_call.1
= control target key start
LH: loop header
LB: loop body
LE: loop exit
PB: predicated region body
PF: predicated region fallthrough
CT: control target
= control target key end

     0   :  { %v239_v1 = vmov 0.0   ;;  %vm240_vm0 = vmmov 0   ;;  %s321_s0 = inlined_call_operand.vmem [shape: f32[16,64], index: 0, kind: input, shape index: {}]   ;;  %s322_s1 = inlined_call_operand.vmem [shape: bf16[64,32], index: 1, kind: input, shape index: {}]   ;;  %s323_s2 = inlined_call_operand.vmem [shape: f32[1,32], index: 2, kind: input, shape index: {}]   ;;  %s324_s3 = inlined_call_operand.vmem [shape: f32[16,32], index: 3, kind: input, shape index: {}]   ;;  %s325_s4 = inlined_call_operand.vmem [shape: f32[1,32], index: 4, kind: input, shape index: {}]   ;;  %s326_s5 = inlined_call_operand.vmem [shape: f32[1,32], index: 5, kind: input, shape index: {}]   ;;  %s327_s6 = inlined_call_operand.hbm [shape: f32[16,32], index: 6, kind: output, shape index: {}]  }
   0x1   :  { %v209_v0 = vld [vmem:[%s322_s1 + $0x18] sm:$0xff]   ;;  %192 = vmatprep.subr.bf16.mxu0 %v239_v1  ;;  %v210_v2 = vld [vmem:[%s322_s1 + $0x10] sm:$0xff]   ;;  %200 = vmatprep.mubr.msk.bf16.mxu0 %vm240_vm0, %v239_v1 }
   0x2   :  { %193 = vmatpush3.bf16.msra.mxu0 %v209_v0 }
   0x3   :  { %194 = vmatprep.subr.bf16.mxu0 %v239_v1 }
   0x4   :  { %11 = vsyncpa [#allocation3], 0  ;;  %v211_v3 = vld [vmem:[%s322_s1 + $0x8] sm:$0xff]   ;;  %v212_v4 = vld [vmem:[%s322_s1] sm:$0xff]   ;;  %vm67_vm1 = vcmask 523264   ;;  %vm116_vm2 = vcmask 261120  }
   0x5   :  { %v25_v5 = vld [vmem:[%s321_s0] sm:$0xff]  ;;  %v26_v6 = vld [vmem:[%s321_s0 + $0x8] sm:$0xff]  ;;  %s241_s15 = smov [#allocation2]  }
   0x6   :  { %195 = vmatpush3.bf16.msra.mxu0 %v210_v2  ;;  %v27_v7 = vpack.c.bf16 %v26_v6, %v25_v5  ;;  %v179_v8 = vld [vmem:[%s323_s2] ss:$0 sm:$0xff]  ;;  %v113_v15 = vld [vmem:[%s324_s3 + $0x8] sm:$0xff]  ;;  %s168_s16 = sshll.u32 %s241_s15, 4  ;;  %s169_s16 = int_to_ptr.vmem [resolvable:$true] %s168_s16 }
   0x7   :  { %196 = vmatprep.subr.bf16.mxu0 %v239_v1  ;;  %v112_v10 = vld [vmem:[%s324_s3] sm:$0xff]  ;;  %s217_s17 = scalar_lea.vmem %s169_s16, 256  ;;  %p222_p1 = scmp.lt.s32.totalorder %s169_s16, %s169_s16 }
   0x8   :  { %v185_v38 = vld [vmem:[%s325_s4] ss:$0 sm:$0xff]  ;;  %p218_p0 = scmp.ne.s32.totalorder %s169_s16, %s217_s17  ;;  %p223_p2 = scmp.lt.s32.totalorder %s217_s17, %s217_s17 }
   0x9   :  { %v186_v40 = vld [vmem:[%s326_s5] ss:$0 sm:$0xff] }
   0xa   :  { %197 = vmatpush3.bf16.msra.mxu0 %v211_v3  ;;  %p224_p3 = por %p223_p2, %p222_p1 }
   0xb   :  { %198 = vmatprep.subr.bf16.mxu0 %v239_v1 }
   0xc   :  { %p225_p4 = pnand %p224_p3, %p218_p0 }
   0xe   :  { %199 = vmatpush3.bf16.msra.mxu0 %v212_v4 }
  0x11   :  { %201 = vmatmul.mubr.msk.bf16.vlgmr.msra.gmra.mxu0 %vm67_vm1, %v27_v7 }
  0xd1   :  { %v105_v9 = vpop.f32.mrf.mxu0 }
  0xd2   :  { %v106_v11 = vadd.f32 %v179_v8, %v105_v9 }
  0xd3   :  { %v202_v12 = vpop.f32.mrf.mxu0 }
  0xd4   :  { %v114_v13 = vadd.f32 %v112_v10, %v106_v11 }
  0xd5   :  { %v108_v14 = vpop.f32.mrf.mxu0 }
  0xd6   :  { %v109_v16 = vadd.f32 %v179_v8, %v108_v14  ;;  %v117_v17 = vsel %vm116_vm2, %v114_v13, 0.0 }
  0xd7   :  { %118 = vadd.xlane.f32.xlu0 %v117_v17  ;;  %v203_v18 = vpop.f32.mrf.mxu0 }
  0xd8   :  { %v115_v19 = vadd.f32 %v113_v15, %v109_v16 }
  0xda   :  { %v120_v20 = vsel %vm116_vm2, %v115_v19, 0.0 }
  0xdb   :  { %121 = vadd.xlane.f32.xlu0 %v120_v20 }
 0x160   :  { %v119_v21 = vpop.xlane.xlu0 %118 }
 0x161   :  { %v123_v22 = vmul.f32 0.03125, %v119_v21 }
 0x163   :  { %v125_v23 = vsub.f32 %v114_v13, %v123_v22 }
 0x164   :  { %v122_v24 = vpop.xlane.xlu0 %121 }
 0x165   :  { %v124_v25 = vmul.f32 0.03125, %v122_v24  ;;  %v127_v26 = vmul.f32 %v125_v23, %v125_v23 }
 0x167   :  { %v126_v27 = vsub.f32 %v115_v19, %v124_v25  ;;  %v129_v28 = vsel %vm116_vm2, %v127_v26, 0.0 }
 0x168   :  { %130 = vadd.xlane.f32.xlu1 %v129_v28 }
 0x169   :  { %v128_v29 = vmul.f32 %v126_v27, %v126_v27 }
 0x16b   :  { %v132_v30 = vsel %vm116_vm2, %v128_v29, 0.0 }
 0x16c   :  { %133 = vadd.xlane.f32.xlu1 %v132_v30 }
 0x1f1   :  { %v131_v31 = vpop.xlane.xlu1 %130 }
 0x1f2   :  { %v135_v32 = vmul.f32 0.03125, %v131_v31 }
 0x1f4   :  { %v137_v33 = vadd.f32 1e-12, %v135_v32 }
 0x1f5   :  { %v134_v34 = vpop.xlane.xlu1 %133 }
 0x1f6   :  { %213 = vrsqrt.f32 %v137_v33  ;;  %v136_v35 = vmul.f32 0.03125, %v134_v34 }
 0x1f8   :  { %v138_v36 = vadd.f32 1e-12, %v136_v35 }
 0x1fa   :  { %215 = vrsqrt.f32 %v138_v36 }
 0x203   :  { %v214_v37 = vpop.eup %213 }
 0x204   :  { %v142_v39 = vmul.f32 %v214_v37, %v125_v23 }
 0x206   :  { %v150_v41 = vmul.f32 %v185_v38, %v142_v39 }
 0x207   :  { %v216_v42 = vpop.eup %215 }
 0x208   :  { %v143_v43 = vmul.f32 %v216_v42, %v126_v27  ;;  %v159_v44 = vadd.f32 %v186_v40, %v150_v41 }
 0x20a   :  { %v151_v45 = vmul.f32 %v185_v38, %v143_v43  ;;  %161 = vst.msk [vmem:[#allocation2] sm:$0xff] %vm116_vm2, %v159_v44 }
 0x20c   :  { %v160_v46 = vadd.f32 %v186_v40, %v151_v45 }
 0x20e   :  { %162 = vst.msk [vmem:[#allocation2 + $0x8] sm:$0xff] %vm116_vm2, %v160_v46 }
 0x20f   :  { %228 = shalt.err (!%p225_p4)
}
 0x210   :  { %s242_s4 = smov 128   ;;  %s243_s5 = smov 8  }
 0x211   :  { %174 = dma.vmem_to_hbm [thread:$0]  %s169_s16, 256, %s327_s6, [#allocation3], %s242_s4, %s242_s4, %s243_s5  }
 0x212   :  { %237 = dma.done.wait [#allocation3], 256  }
 0x213   :  { %238 = vsyncadd [#allocation3], 4294967040 }
 0x214   :  { %178 = vsyncpa [#allocation3], 1 }

</bundles_post_ra>
